<compile_context>
chip_gen: v6e
topology: v6e:2x2x1
jax: 0.10.0
libtpu: 0.0.40
codegen_flags: <defaults>
</compile_context>

<pallas_src>
import functools

import jax
import jax.numpy as jnp
from jax.experimental import pallas as pl
from jax.experimental.pallas import tpu as pltpu


def _round_up(x, m):
    return ((x + m - 1) // m) * m


# ---------------------------------------------------------------------------
# Kernels
# ---------------------------------------------------------------------------
def _linear_kernel_single_k(x_ref, w_ref, b_ref, o_ref):
    """Whole K fits in one tile: single MXU pass, no accumulator scratch."""
    acc = jax.lax.dot_general(
        x_ref[...], w_ref[...],
        dimension_numbers=(((1,), (1,)), ((), ())),   # x @ w.T on the MXU
        preferred_element_type=jnp.float32,
    )
    o_ref[...] = (acc + b_ref[...]).astype(o_ref.dtype)


def _linear_kernel_multi_k(x_ref, w_ref, b_ref, o_ref, acc_ref):
    """General K-tiled path with a resident f32 accumulator."""
    k = pl.program_id(2)

    @pl.when(k == 0)
    def _():
        acc_ref[...] = jnp.zeros_like(acc_ref)

    # x tile: (tm, tk); w tile: (tn, tk) in PyTorch (out, in) layout.
    acc_ref[...] += jax.lax.dot_general(
        x_ref[...], w_ref[...],
        dimension_numbers=(((1,), (1,)), ((), ())),
        preferred_element_type=jnp.float32,
    )

    @pl.when(k == pl.num_programs(2) - 1)
    def _():
        o_ref[...] = (acc_ref[...] + b_ref[...]).astype(o_ref.dtype)


# ---------------------------------------------------------------------------
# Wrapper
# ---------------------------------------------------------------------------
def linear_cls_forward(x, weight, bias, *, tm=256, tn=512, tk=512,
                       compute_dtype=None):
    """y = x @ weight.T + bias, matching torch.nn.Linear.

    x:      (..., hidden_in)
    weight: (hidden_out, hidden_in)  -- PyTorch layout, NOT transposed here
    bias:   (hidden_out,)
    compute_dtype: e.g. jnp.bfloat16 for bf16 MXU throughput with f32
                   accumulation (output is cast back to x.dtype).
    """
    *lead, k_dim = x.shape
    n_dim, k_w = weight.shape
    assert k_w == k_dim, "weight must be (hidden_out, hidden_in)"

    out_dtype = x.dtype
    if compute_dtype is not None:
        x = x.astype(compute_dtype)
        weight = weight.astype(compute_dtype)

    m_dim = 1
    for d in lead:
        m_dim *= d
    x2d = x.reshape(m_dim, k_dim)

    # Clamp tiles for small problems while keeping (8, 128) alignment and a
    # lane-dense (multiple-of-128) output last dim.
    tm = min(tm, _round_up(m_dim, 8))
    tn = min(tn, _round_up(n_dim, 128))
    tk = min(tk, _round_up(k_dim, 128))

    mp = _round_up(m_dim, tm)
    np_ = _round_up(n_dim, tn)
    kp = _round_up(k_dim, tk)

    # Zero-pad ragged dims (zeros along K contribute nothing; padded rows/cols
    # are sliced off after the call).
    if (mp, kp) != (m_dim, k_dim):
        x2d = jnp.pad(x2d, ((0, mp - m_dim), (0, kp - k_dim)))
    w_p = weight
    if (np_, kp) != (n_dim, k_dim):
        w_p = jnp.pad(weight, ((0, np_ - n_dim), (0, kp - k_dim)))
    b_p = bias.astype(jnp.float32)
    if np_ != n_dim:
        b_p = jnp.pad(b_p, (0, np_ - n_dim))
    b2d = b_p.reshape(1, np_)

    in_bytes = jnp.dtype(x2d.dtype).itemsize
    out_bytes = jnp.dtype(out_dtype).itemsize

    cost = pl.CostEstimate(
        flops=2 * m_dim * n_dim * k_dim,
        bytes_accessed=(m_dim * k_dim + n_dim * k_dim + n_dim) * in_bytes
                       + m_dim * n_dim * out_bytes,
        transcendentals=0,
    )

    single_k = (kp == tk)

    if single_k:
        # -------- fast path: no K loop, no accumulator scratch --------------
        grid = (mp // tm, np_ // tn)
        tile_bytes = 2 * (tm * kp * in_bytes + tn * kp * in_bytes
                          + tn * 4 + tm * tn * out_bytes)
        vmem_limit = min(64 * 1024 * 1024,
                         max(2 * tile_bytes, 16 * 1024 * 1024))
        out2d = pl.pallas_call(
            _linear_kernel_single_k,
            out_shape=jax.ShapeDtypeStruct((mp, np_), out_dtype),
            grid_spec=pltpu.PrefetchScalarGridSpec(
                num_scalar_prefetch=0,
                grid=grid,
                in_specs=[
                    pl.BlockSpec((tm, kp), lambda i, j: (i, 0)),   # x
                    pl.BlockSpec((tn, kp), lambda i, j: (j, 0)),   # weight
                    pl.BlockSpec((1, tn), lambda i, j: (0, j)),    # bias
                ],
                out_specs=pl.BlockSpec((tm, tn), lambda i, j: (i, j)),
            ),
            compiler_params=pltpu.CompilerParams(
                dimension_semantics=("parallel", "parallel"),
                vmem_limit_bytes=vmem_limit,
            ),
            cost_estimate=cost,
        )(x2d, w_p, b2d)
    else:
        # -------- general path: K-tiled reduction with f32 accumulator ------
        grid = (mp // tm, np_ // tn, kp // tk)
        tile_bytes = (2 * (tm * tk * in_bytes + tn * tk * in_bytes
                           + tn * 4 + tm * tn * out_bytes)
                      + tm * tn * 4)
        vmem_limit = min(64 * 1024 * 1024,
                         max(2 * tile_bytes, 16 * 1024 * 1024))
        out2d = pl.pallas_call(
            _linear_kernel_multi_k,
            out_shape=jax.ShapeDtypeStruct((mp, np_), out_dtype),
            grid_spec=pltpu.PrefetchScalarGridSpec(
                num_scalar_prefetch=0,
                grid=grid,
                in_specs=[
                    pl.BlockSpec((tm, tk), lambda i, j, k: (i, k)),  # x
                    pl.BlockSpec((tn, tk), lambda i, j, k: (j, k)),  # weight
                    pl.BlockSpec((1, tn), lambda i, j, k: (0, j)),   # bias
                ],
                out_specs=pl.BlockSpec((tm, tn), lambda i, j, k: (i, j)),
                scratch_shapes=[pltpu.VMEM((tm, tn), jnp.float32)],
            ),
            compiler_params=pltpu.CompilerParams(
                dimension_semantics=("parallel", "parallel", "arbitrary"),
                vmem_limit_bytes=vmem_limit,
            ),
            cost_estimate=cost,
        )(x2d, w_p, b2d)

    return out2d[:m_dim, :n_dim].reshape(*lead, n_dim)


if __name__ == "__main__":
    key = jax.random.PRNGKey(0)
    batch, seq, hidden = 2, 8, 32

    kx, kw, kb = jax.random.split(key, 3)
    x = jax.random.normal(kx, (batch, seq, hidden), dtype=jnp.float32)
    # Deterministic init mimicking nn.Linear: U(-1/sqrt(hidden), 1/sqrt(hidden))
    bound = 1.0 / (hidden ** 0.5)
    weight = jax.random.uniform(kw, (hidden, hidden), jnp.float32, -bound, bound)
    bias = jax.random.uniform(kb, (hidden,), jnp.float32, -bound, bound)

    fwd = jax.jit(functools.partial(linear_cls_forward))
    y = fwd(x, weight, bias)
    jax.block_until_ready(y)

    # Correctness check against plain-JAX reference of the PyTorch semantics.
    y_ref = x @ weight.T + bias
    assert y.shape == (batch, seq, hidden)
    assert jnp.allclose(y, y_ref, atol=1e-5, rtol=1e-5)

    # Exercise the general K-tiled path as well (forces multiple K steps).
    mh = 384
    xb = jax.random.normal(kx, (batch, seq, mh), dtype=jnp.float32)
    wb = jax.random.uniform(kw, (mh, mh), jnp.float32, -1 / mh ** 0.5, 1 / mh ** 0.5)
    bb = jax.random.uniform(kb, (mh,), jnp.float32, -1 / mh ** 0.5, 1 / mh ** 0.5)
    yb = jax.jit(functools.partial(linear_cls_forward, tk=128))(xb, wb, bb)
    jax.block_until_ready(yb)
    assert jnp.allclose(yb, xb @ wb.T + bb, atol=1e-4, rtol=1e-4)

    print("KERNEL_OK")
</pallas_src>

<mosaic_0001>
module attributes {stable_mosaic.version = 11 : i64} {
  func.func @_linear_kernel_single_k(%arg0: i32, %arg1: i32, %arg2: memref<16x128xf32, #tpu.memory_space<vmem>>, %arg3: memref<128x128xf32, #tpu.memory_space<vmem>>, %arg4: memref<1x128xf32, #tpu.memory_space<vmem>>, %arg5: memref<16x128xf32, #tpu.memory_space<vmem>>) attributes {dimension_semantics = [#tpu.dimension_semantics<parallel>, #tpu.dimension_semantics<parallel>], iteration_bounds = array<i64: 1, 1>, scalar_prefetch = 0 : i64, scratch_operands = 0 : i64, tpu.core_type = #tpu.core_type<tc>, window_params = [{transform_indices = @transform_0, window_bounds = array<i64: 16, 128>}, {transform_indices = @transform_1, window_bounds = array<i64: 128, 128>}, {transform_indices = @transform_2, window_bounds = array<i64: 1, 128>}, {transform_indices = @transform_3, window_bounds = array<i64: 16, 128>}]} {
    %c0 = arith.constant 0 : index
    %c0_0 = arith.constant 0 : index
    %0 = vector.load %arg2[%c0, %c0_0] : memref<16x128xf32, #tpu.memory_space<vmem>>, vector<16x128xf32>
    %c0_1 = arith.constant 0 : index
    %c0_2 = arith.constant 0 : index
    %1 = vector.load %arg3[%c0_1, %c0_2] : memref<128x128xf32, #tpu.memory_space<vmem>>, vector<128x128xf32>
    %cst = arith.constant dense<0.000000e+00> : vector<16x128xf32>
    %2 = tpu.matmul %0, %1, %cst {dimension_numbers = #tpu.dot_dimension_numbers<[1], [1], [0], [0], [0, 0, 1, 0], [], []>} : vector<16x128xf32>, vector<128x128xf32>, vector<16x128xf32> -> vector<16x128xf32>
    %c0_3 = arith.constant 0 : index
    %c0_4 = arith.constant 0 : index
    %3 = vector.load %arg4[%c0_3, %c0_4] : memref<1x128xf32, #tpu.memory_space<vmem>>, vector<1x128xf32>
    %4 = vector.broadcast %3 : vector<1x128xf32> to vector<16x128xf32>
    %5 = arith.addf %2, %4 : vector<16x128xf32>
    %c0_5 = arith.constant 0 : index
    %c0_6 = arith.constant 0 : index
    %6 = vector.load %arg5[%c0_5, %c0_6] : memref<16x128xf32, #tpu.memory_space<vmem>>, vector<16x128xf32>
    tpu.vector_store %arg5[%c0_5, %c0_6], %5 {strides = array<i32>} : memref<16x128xf32, #tpu.memory_space<vmem>>, vector<16x128xf32>,
    return
  }
  func.func @transform_0(%arg0: i32, %arg1: i32) -> (i32, i32) {
    %c0_i32 = arith.constant 0 : i32
    %c0_i32_0 = arith.constant 0 : i32
    return %arg0, %c0_i32 : i32, i32
  }
  func.func @transform_1(%arg0: i32, %arg1: i32) -> (i32, i32) {
    %c0_i32 = arith.constant 0 : i32
    %c0_i32_0 = arith.constant 0 : i32
    return %arg1, %c0_i32 : i32, i32
  }
  func.func @transform_2(%arg0: i32, %arg1: i32) -> (i32, i32) {
    %c0_i32 = arith.constant 0 : i32
    %c0_i32_0 = arith.constant 0 : i32
    return %c0_i32, %arg1 : i32, i32
  }
  func.func @transform_3(%arg0: i32, %arg1: i32) -> (i32, i32) {
    %c0_i32 = arith.constant 0 : i32
    return %arg0, %arg1 : i32, i32
  }
}

</mosaic_0001>

<bundles_post_ra>
// kernel: linear_cls_forward.1
= control target key start
LH: loop header
LB: loop body
LE: loop exit
PB: predicated region body
PF: predicated region fallthrough
CT: control target
= control target key end

     0   :  { %s257_s1 = inlined_call_operand.vmem [shape: f32[128,128], index: 1, kind: input, shape index: {}]   ;;  %s258_s0 = inlined_call_operand.vmem [shape: f32[16,128], index: 0, kind: input, shape index: {}]   ;;  %s259_s2 = inlined_call_operand.vmem [shape: f32[1,128], index: 2, kind: input, shape index: {}]   ;;  %s260_s3 = inlined_call_operand.vmem [shape: f32[16,128], index: 3, kind: output, shape index: {}]  }
   0x1   :  { %v31_v0 = vld [vmem:[%s257_s1 + $0x78] sm:$0xff]  ;;  %v30_v1 = vld [vmem:[%s257_s1 + $0x70] sm:$0xff]  ;;  %v29_v2 = vld [vmem:[%s257_s1 + $0x68] sm:$0xff] }
   0x2   :  { %139 = vmatprep.subr.mxu0 %v31_v0  ;;  %v14_v3 = vld [vmem:[%s258_s0] sm:$0xff]  ;;  %v27_v5 = vld [vmem:[%s257_s1 + $0x58] sm:$0xff]  ;;  %v26_v6 = vld [vmem:[%s257_s1 + $0x50] sm:$0xff] }
   0x3   :  { %140 = vmatpush3.xpose.msra.mxu0 %v31_v0  ;;  %171 = vmatprep.mubr.f32.mxu0 %v14_v3  ;;  %v28_v4 = vld [vmem:[%s257_s1 + $0x60] sm:$0xff]  ;;  %v25_v7 = vld [vmem:[%s257_s1 + $0x48] sm:$0xff]  ;;  %v23_v9 = vld [vmem:[%s257_s1 + $0x38] sm:$0xff] }
   0x4   :  { %141 = vmatprep.subr.mxu0 %v30_v1  ;;  %v24_v8 = vld [vmem:[%s257_s1 + $0x40] sm:$0xff]  ;;  %v22_v10 = vld [vmem:[%s257_s1 + $0x30] sm:$0xff]  ;;  %v21_v11 = vld [vmem:[%s257_s1 + $0x28] sm:$0xff] }
   0x5   :  { %v20_v12 = vld [vmem:[%s257_s1 + $0x20] sm:$0xff]  ;;  %v19_v13 = vld [vmem:[%s257_s1 + $0x18] sm:$0xff]  ;;  %v18_v14 = vld [vmem:[%s257_s1 + $0x10] sm:$0xff] }
   0x6   :  { %v17_v15 = vld [vmem:[%s257_s1 + $0x8] sm:$0xff]  ;;  %v16_v16 = vld [vmem:[%s257_s1] sm:$0xff] }
   0x7   :  { %142 = vmatpush3.xpose.msra.mxu0 %v30_v1  ;;  %v15_v17 = vld [vmem:[%s258_s0 + $0x8] sm:$0xff]  ;;  %v120_v18 = vld [vmem:[%s259_s2] ss:$0 sm:$0xff] }
   0x8   :  { %143 = vmatprep.subr.mxu0 %v29_v2 }
   0xb   :  { %144 = vmatpush3.xpose.msra.mxu0 %v29_v2 }
   0xc   :  { %145 = vmatprep.subr.mxu0 %v28_v4 }
   0xf   :  { %146 = vmatpush3.xpose.msra.mxu0 %v28_v4 }
  0x10   :  { %147 = vmatprep.subr.mxu0 %v27_v5 }
  0x13   :  { %148 = vmatpush3.xpose.msra.mxu0 %v27_v5 }
  0x14   :  { %149 = vmatprep.subr.mxu0 %v26_v6 }
  0x17   :  { %150 = vmatpush3.xpose.msra.mxu0 %v26_v6 }
  0x18   :  { %151 = vmatprep.subr.mxu0 %v25_v7 }
  0x1b   :  { %152 = vmatpush3.xpose.msra.mxu0 %v25_v7 }
  0x1c   :  { %153 = vmatprep.subr.mxu0 %v24_v8 }
  0x1f   :  { %154 = vmatpush3.xpose.msra.mxu0 %v24_v8 }
  0x20   :  { %155 = vmatprep.subr.mxu0 %v23_v9 }
  0x23   :  { %156 = vmatpush3.xpose.msra.mxu0 %v23_v9 }
  0x24   :  { %157 = vmatprep.subr.mxu0 %v22_v10 }
  0x27   :  { %158 = vmatpush3.xpose.msra.mxu0 %v22_v10 }
  0x28   :  { %159 = vmatprep.subr.mxu0 %v21_v11 }
  0x2b   :  { %160 = vmatpush3.xpose.msra.mxu0 %v21_v11 }
  0x2c   :  { %161 = vmatprep.subr.mxu0 %v20_v12 }
  0x2f   :  { %162 = vmatpush3.xpose.msra.mxu0 %v20_v12 }
  0x30   :  { %163 = vmatprep.subr.mxu0 %v19_v13 }
  0x33   :  { %164 = vmatpush3.xpose.msra.mxu0 %v19_v13 }
  0x34   :  { %165 = vmatprep.subr.mxu0 %v18_v14 }
  0x37   :  { %166 = vmatpush3.xpose.msra.mxu0 %v18_v14 }
  0x38   :  { %167 = vmatprep.subr.mxu0 %v17_v15 }
  0x3b   :  { %168 = vmatpush3.xpose.msra.mxu0 %v17_v15 }
  0x3c   :  { %169 = vmatprep.subr.mxu0 %v16_v16 }
  0x3f   :  { %170 = vmatpush3.xpose.msra.mxu0 %v16_v16 }
  0x42   :  { %172 = vmatmul.mubr.f32.vlgmr.msra.gmra.mxu0 %v15_v17 }
 0x102   :  { %v173_v19 = vpop.f32.mrf.mxu0 }
 0x103   :  { %v111_v20 = vadd.f32 %v173_v19, %v120_v18 }
 0x104   :  { %v105_v21 = vpop.f32.mrf.mxu0 }
 0x105   :  { %115 = vst [vmem:[%s260_s3 + $0x8] sm:$0xff] %v111_v20  ;;  %v106_v22 = vadd.f32 %v120_v18, %v105_v21 }
 0x107   :  { %114 = vst [vmem:[%s260_s3] sm:$0xff] %v106_v22 }

</bundles_post_ra>
